<compile_context>
chip_gen: v5e
topology: v5e:2x2
jax: 0.10.0
libtpu: 0.0.40
codegen_flags: <defaults>
</compile_context>

<pallas_src>
import jax
import jax.numpy as jnp
from jax.experimental import pallas as pl
from jax.experimental.pallas import tpu as pltpu

NUM_SAMPLES = 10
DROP_P = 0.5


def _msd_kernel(x_ref, bits_ref, w_ref, b_ref, o_ref):
    x = x_ref[...].astype(jnp.float32)
    bits = bits_ref[...]                       # int32, low 10 bits are keep-flags

    # popcount of the low NUM_SAMPLES bits == number of dropout samples that
    # keep this element (unrolled shift-and-add, all int32 VPU ops).
    count = bits & 1
    for i in range(1, NUM_SAMPLES):
        count = count + ((bits >> i) & 1)

    # mean of the 10 dropout samples of x; the 1/((1-p)*NUM_SAMPLES) = 0.2
    # constant is already folded into w_ref by the wrapper.
    acc = x * count.astype(jnp.float32)

    out = jnp.dot(acc.astype(jnp.bfloat16),
                  w_ref[...].astype(jnp.bfloat16),
                  preferred_element_type=jnp.float32)
    out = out + b_ref[...].astype(jnp.float32)
    o_ref[...] = out.astype(o_ref.dtype)


def _pick_tile_b(B, F, C):
    """Largest batch tile whose double-buffered tiles fit a budget safe on
    v5e/v6e/v7x (x f32 + bits i32 + out f32, each double-buffered)."""
    budget = 8 * 1024 * 1024
    per_row = 2 * 4 * (F + F + C)
    tb = max(8, min(1024, budget // max(per_row, 1)))
    tb = (tb // 8) * 8                 # (8, 128) sublane constraint
    if tb >= B:
        return B                       # full-dim block is always legal
    return tb


def classifier_forward(x, weight, bias, key):
    """x: (B, in_feat); weight: (C, in_feat); bias: (C,); key: jax PRNG key."""
    B, F = x.shape
    C = weight.shape[0]

    # One packed draw: low NUM_SAMPLES bits of each int32 are i.i.d. Bernoulli(0.5).
    bits = jax.random.randint(key, (B, F), 0, 1 << NUM_SAMPLES, dtype=jnp.int32)

    # Fold 1/((1-p) * NUM_SAMPLES) into the (tiny) pre-transposed weight.
    w_t = (weight.T * (1.0 / ((1.0 - DROP_P) * NUM_SAMPLES))).astype(jnp.float32)
    b2 = bias.reshape(1, C).astype(jnp.float32)

    tile_b = _pick_tile_b(B, F, C)
    grid = (pl.cdiv(B, tile_b),)

    return pl.pallas_call(
        _msd_kernel,
        out_shape=jax.ShapeDtypeStruct((B, C), x.dtype),
        grid=grid,
        in_specs=[
            pl.BlockSpec((tile_b, F), lambda i: (i, 0)),   # x tile
            pl.BlockSpec((tile_b, F), lambda i: (i, 0)),   # dropout bits tile
            pl.BlockSpec((F, C), lambda i: (0, 0)),        # weight (replicated)
            pl.BlockSpec((1, C), lambda i: (0, 0)),        # bias (replicated)
        ],
        out_specs=pl.BlockSpec((tile_b, C), lambda i: (i, 0)),
        compiler_params=pltpu.CompilerParams(
            dimension_semantics=("parallel",),
            vmem_limit_bytes=32 * 1024 * 1024,
        ),
    )(x, bits, w_t, b2)


if __name__ == "__main__":
    key = jax.random.PRNGKey(0)
    kx, kw, kb, kd = jax.random.split(key, 4)

    B, in_feat, num_classes = 8, 32, 16

    x = jax.random.normal(kx, (B, in_feat), dtype=jnp.float32)
    # nn.Linear(in_feat, num_classes): weight (C, F), bias (C,)
    bound = 1.0 / (in_feat ** 0.5)
    weight = jax.random.uniform(kw, (num_classes, in_feat),
                                minval=-bound, maxval=bound, dtype=jnp.float32)
    bias = jax.random.uniform(kb, (num_classes,),
                              minval=-bound, maxval=bound, dtype=jnp.float32)

    out = classifier_forward(x, weight, bias, kd)
    jax.block_until_ready(out)

    # Pure-JAX reference using the same dropout bits (multi-sample dropout mean).
    bits = jax.random.randint(kd, (B, in_feat), 0, 1 << NUM_SAMPLES, dtype=jnp.int32)
    keeps = jnp.stack([((bits >> i) & 1).astype(jnp.float32)
                       for i in range(NUM_SAMPLES)], axis=0)
    xs = x[None] * keeps / (1.0 - DROP_P)
    ref = (jnp.einsum("sbf,cf->sbc", xs, weight) + bias).mean(axis=0)

    assert out.shape == (B, num_classes) and out.dtype == jnp.float32
    assert jnp.allclose(out, ref, rtol=3e-2, atol=3e-2)  # bf16 matmul tolerance
    print("KERNEL_OK")
</pallas_src>

<mosaic_0001>
module attributes {stable_mosaic.version = 11 : i64} {
  func.func @_msd_kernel(%arg0: i32, %arg1: memref<8x32xf32, #tpu.memory_space<vmem>>, %arg2: memref<8x32xi32, #tpu.memory_space<vmem>>, %arg3: memref<32x16xf32, #tpu.memory_space<vmem>>, %arg4: memref<1x16xf32, #tpu.memory_space<vmem>>, %arg5: memref<8x16xf32, #tpu.memory_space<vmem>>) attributes {dimension_semantics = [#tpu.dimension_semantics<parallel>], iteration_bounds = array<i64: 1>, scalar_prefetch = 0 : i64, scratch_operands = 0 : i64, tpu.core_type = #tpu.core_type<tc>, window_params = [{transform_indices = @transform_0, window_bounds = array<i64: 8, 32>}, {transform_indices = @transform_1, window_bounds = array<i64: 8, 32>}, {pipeline_mode = #tpu.pipeline_mode<synchronous>, transform_indices = @transform_2, window_bounds = array<i64: 32, 16>}, {pipeline_mode = #tpu.pipeline_mode<synchronous>, transform_indices = @transform_3, window_bounds = array<i64: 1, 16>}, {transform_indices = @transform_4, window_bounds = array<i64: 8, 16>}]} {
    %c0 = arith.constant 0 : index
    %c0_0 = arith.constant 0 : index
    %0 = vector.load %arg1[%c0, %c0_0] : memref<8x32xf32, #tpu.memory_space<vmem>>, vector<8x32xf32>
    %c0_1 = arith.constant 0 : index
    %c0_2 = arith.constant 0 : index
    %1 = vector.load %arg2[%c0_1, %c0_2] : memref<8x32xi32, #tpu.memory_space<vmem>>, vector<8x32xi32>
    %c1_i32 = arith.constant 1 : i32
    %2 = vector.broadcast %c1_i32 : i32 to vector<8x32xi32>
    %3 = arith.andi %1, %2 : vector<8x32xi32>
    %c1_i32_3 = arith.constant 1 : i32
    %4 = vector.broadcast %c1_i32_3 : i32 to vector<8x32xi32>
    %5 = arith.shrsi %1, %4 : vector<8x32xi32>
    %c1_i32_4 = arith.constant 1 : i32
    %6 = vector.broadcast %c1_i32_4 : i32 to vector<8x32xi32>
    %7 = arith.andi %5, %6 : vector<8x32xi32>
    %8 = arith.addi %3, %7 : vector<8x32xi32>
    %c2_i32 = arith.constant 2 : i32
    %9 = vector.broadcast %c2_i32 : i32 to vector<8x32xi32>
    %10 = arith.shrsi %1, %9 : vector<8x32xi32>
    %c1_i32_5 = arith.constant 1 : i32
    %11 = vector.broadcast %c1_i32_5 : i32 to vector<8x32xi32>
    %12 = arith.andi %10, %11 : vector<8x32xi32>
    %13 = arith.addi %8, %12 : vector<8x32xi32>
    %c3_i32 = arith.constant 3 : i32
    %14 = vector.broadcast %c3_i32 : i32 to vector<8x32xi32>
    %15 = arith.shrsi %1, %14 : vector<8x32xi32>
    %c1_i32_6 = arith.constant 1 : i32
    %16 = vector.broadcast %c1_i32_6 : i32 to vector<8x32xi32>
    %17 = arith.andi %15, %16 : vector<8x32xi32>
    %18 = arith.addi %13, %17 : vector<8x32xi32>
    %c4_i32 = arith.constant 4 : i32
    %19 = vector.broadcast %c4_i32 : i32 to vector<8x32xi32>
    %20 = arith.shrsi %1, %19 : vector<8x32xi32>
    %c1_i32_7 = arith.constant 1 : i32
    %21 = vector.broadcast %c1_i32_7 : i32 to vector<8x32xi32>
    %22 = arith.andi %20, %21 : vector<8x32xi32>
    %23 = arith.addi %18, %22 : vector<8x32xi32>
    %c5_i32 = arith.constant 5 : i32
    %24 = vector.broadcast %c5_i32 : i32 to vector<8x32xi32>
    %25 = arith.shrsi %1, %24 : vector<8x32xi32>
    %c1_i32_8 = arith.constant 1 : i32
    %26 = vector.broadcast %c1_i32_8 : i32 to vector<8x32xi32>
    %27 = arith.andi %25, %26 : vector<8x32xi32>
    %28 = arith.addi %23, %27 : vector<8x32xi32>
    %c6_i32 = arith.constant 6 : i32
    %29 = vector.broadcast %c6_i32 : i32 to vector<8x32xi32>
    %30 = arith.shrsi %1, %29 : vector<8x32xi32>
    %c1_i32_9 = arith.constant 1 : i32
    %31 = vector.broadcast %c1_i32_9 : i32 to vector<8x32xi32>
    %32 = arith.andi %30, %31 : vector<8x32xi32>
    %33 = arith.addi %28, %32 : vector<8x32xi32>
    %c7_i32 = arith.constant 7 : i32
    %34 = vector.broadcast %c7_i32 : i32 to vector<8x32xi32>
    %35 = arith.shrsi %1, %34 : vector<8x32xi32>
    %c1_i32_10 = arith.constant 1 : i32
    %36 = vector.broadcast %c1_i32_10 : i32 to vector<8x32xi32>
    %37 = arith.andi %35, %36 : vector<8x32xi32>
    %38 = arith.addi %33, %37 : vector<8x32xi32>
    %c8_i32 = arith.constant 8 : i32
    %39 = vector.broadcast %c8_i32 : i32 to vector<8x32xi32>
    %40 = arith.shrsi %1, %39 : vector<8x32xi32>
    %c1_i32_11 = arith.constant 1 : i32
    %41 = vector.broadcast %c1_i32_11 : i32 to vector<8x32xi32>
    %42 = arith.andi %40, %41 : vector<8x32xi32>
    %43 = arith.addi %38, %42 : vector<8x32xi32>
    %c9_i32 = arith.constant 9 : i32
    %44 = vector.broadcast %c9_i32 : i32 to vector<8x32xi32>
    %45 = arith.shrsi %1, %44 : vector<8x32xi32>
    %c1_i32_12 = arith.constant 1 : i32
    %46 = vector.broadcast %c1_i32_12 : i32 to vector<8x32xi32>
    %47 = arith.andi %45, %46 : vector<8x32xi32>
    %48 = arith.addi %43, %47 : vector<8x32xi32>
    %49 = arith.sitofp %48 : vector<8x32xi32> to vector<8x32xf32>
    %50 = arith.mulf %0, %49 : vector<8x32xf32>
    %51 = arith.truncf %50 : vector<8x32xf32> to vector<8x32xbf16>
    %c0_13 = arith.constant 0 : index
    %c0_14 = arith.constant 0 : index
    %52 = vector.load %arg3[%c0_13, %c0_14] : memref<32x16xf32, #tpu.memory_space<vmem>>, vector<32x16xf32>
    %53 = arith.truncf %52 : vector<32x16xf32> to vector<32x16xbf16>
    %cst = arith.constant dense<0.000000e+00> : vector<8x16xf32>
    %54 = tpu.matmul %51, %53, %cst {dimension_numbers = #tpu.dot_dimension_numbers<[1], [0], [0], [1], [0, 0, 1, 1], [], []>} : vector<8x32xbf16>, vector<32x16xbf16>, vector<8x16xf32> -> vector<8x16xf32>
    %c0_15 = arith.constant 0 : index
    %c0_16 = arith.constant 0 : index
    %55 = vector.load %arg4[%c0_15, %c0_16] : memref<1x16xf32, #tpu.memory_space<vmem>>, vector<1x16xf32>
    %56 = vector.broadcast %55 : vector<1x16xf32> to vector<8x16xf32>
    %57 = arith.addf %54, %56 : vector<8x16xf32>
    %c0_17 = arith.constant 0 : index
    %c0_18 = arith.constant 0 : index
    %58 = vector.load %arg5[%c0_17, %c0_18] : memref<8x16xf32, #tpu.memory_space<vmem>>, vector<8x16xf32>
    tpu.vector_store %arg5[%c0_17, %c0_18], %57 {strides = array<i32>} : memref<8x16xf32, #tpu.memory_space<vmem>>, vector<8x16xf32>,
    return
  }
  func.func @transform_0(%arg0: i32) -> (i32, i32) {
    %c0_i32 = arith.constant 0 : i32
    %c0_i32_0 = arith.constant 0 : i32
    return %arg0, %c0_i32 : i32, i32
  }
  func.func @transform_1(%arg0: i32) -> (i32, i32) {
    %c0_i32 = arith.constant 0 : i32
    %c0_i32_0 = arith.constant 0 : i32
    return %arg0, %c0_i32 : i32, i32
  }
  func.func @transform_2(%arg0: i32) -> (i32, i32) {
    %c0_i32 = arith.constant 0 : i32
    %c0_i32_0 = arith.constant 0 : i32
    %c0_i32_1 = arith.constant 0 : i32
    return %c0_i32, %c0_i32_0 : i32, i32
  }
  func.func @transform_3(%arg0: i32) -> (i32, i32) {
    %c0_i32 = arith.constant 0 : i32
    %c0_i32_0 = arith.constant 0 : i32
    %c0_i32_1 = arith.constant 0 : i32
    return %c0_i32, %c0_i32_0 : i32, i32
  }
  func.func @transform_4(%arg0: i32) -> (i32, i32) {
    %c0_i32 = arith.constant 0 : i32
    %c0_i32_0 = arith.constant 0 : i32
    return %arg0, %c0_i32 : i32, i32
  }
}

</mosaic_0001>

<bundles_post_ra>
// kernel: tpu_custom_call.1
= control target key start
LH: loop header
LB: loop body
LE: loop exit
PB: predicated region body
PF: predicated region fallthrough
CT: control target
= control target key end

     0   :  { %s176_s0 = inlined_call_operand.vmem [shape: f32[8,32], index: 0, kind: input, shape index: {}]   ;;  %s177_s1 = inlined_call_operand.vmem [shape: s32[8,32], index: 1, kind: input, shape index: {}]   ;;  %s178_s2 = inlined_call_operand.vmem [shape: f32[32,16], index: 2, kind: input, shape index: {}]   ;;  %s179_s3 = inlined_call_operand.vmem [shape: f32[1,16], index: 3, kind: input, shape index: {}]   ;;  %s180_s4 = inlined_call_operand.hbm [shape: f32[8,16], index: 4, kind: output, shape index: {}]  }
   0x1   :  { %v54_v0 = vld [vmem:[%s178_s2 + $0x10] sm:$0xff]  ;;  %v55_v1 = vld [vmem:[%s178_s2 + $0x18] sm:$0xff]  ;;  %v52_v2 = vld [vmem:[%s178_s2] sm:$0xff] }
   0x2   :  { %v57_v3 = vpack.c.bf16 %v55_v1, %v54_v0  ;;  %v53_v4 = vld [vmem:[%s178_s2 + $0x8] sm:$0xff]  ;;  %v20_v5 = vld [vmem:[%s177_s1] sm:$0xff] }
   0x3   :  { %v21_v6 = vand.u32 1, %v20_v5  ;;  %v22_v7 = vshra.s32 %v20_v5, 1  ;;  %v25_v8 = vshra.s32 %v20_v5, 2  ;;  %v56_v9 = vpack.c.bf16 %v53_v4, %v52_v2 }
   0x4   :  { %72 = vmatpush.bf16.msra.mxu0 %v57_v3  ;;  %v28_v10 = vshra.s32 %v20_v5, 3  ;;  %v31_v13 = vshra.s32 %v20_v5, 4 }
   0x5   :  { %v23_v11 = vand.u32 1, %v22_v7  ;;  %v26_v12 = vand.u32 1, %v25_v8 }
   0x6   :  { %9 = vsyncpa [#allocation3], 0  ;;  %v29_v15 = vand.u32 1, %v28_v10  ;;  %v34_v16 = vshra.s32 %v20_v5, 5  ;;  %v32_v18 = vand.u32 1, %v31_v13  ;;  %v37_v19 = vshra.s32 %v20_v5, 6 }
   0x7   :  { %v24_v14 = vadd.s32 %v23_v11, %v21_v6  ;;  %v40_v22 = vshra.s32 %v20_v5, 7  ;;  %v43_v25 = vshra.s32 %v20_v5, 8  ;;  %v46_v28 = vshra.s32 %v20_v5, 9  ;;  %v19_v35 = vld [vmem:[%s176_s0] sm:$0xff]  ;;  %s126_s27 = smov [#allocation2]   ;;  %s88_s5 = sshll.u32 %s180_s4, 4  ;;  %s89_s5 = int_to_ptr.hbm [resolvable:$true] %s88_s5 }
   0x8   :  { %73 = vmatpush.bf16.msra.mxu0 %v56_v9  ;;  %v35_v21 = vand.u32 1, %v34_v16  ;;  %v38_v24 = vand.u32 1, %v37_v19  ;;  %vm62_vm0 = vcmask 261120   ;;  %v99_v39 = vld [vmem:[%s179_s3] ss:$0 sm:$0xff]  ;;  %s86_s28 = sshll.u32 %s126_s27, 4  ;;  %s87_s28 = int_to_ptr.vmem [resolvable:$true] %s86_s28 }
   0x9   :  { %v27_v17 = vadd.s32 %v26_v12, %v24_v14  ;;  %v41_v27 = vand.u32 1, %v40_v22  ;;  %v44_v30 = vand.u32 1, %v43_v25  ;;  %v47_v32 = vand.u32 1, %v46_v28 }
   0xa   :  { %vm79_vm1 = vcmask 130048  }
   0xb   :  { %v30_v20 = vadd.s32 %v29_v15, %v27_v17 }
   0xd   :  { %v33_v23 = vadd.s32 %v32_v18, %v30_v20 }
   0xf   :  { %v36_v26 = vadd.s32 %v35_v21, %v33_v23 }
  0x11   :  { %v39_v29 = vadd.s32 %v38_v24, %v36_v26 }
  0x13   :  { %v42_v31 = vadd.s32 %v41_v27, %v39_v29 }
  0x15   :  { %v45_v33 = vadd.s32 %v44_v30, %v42_v31 }
  0x17   :  { %v48_v34 = vadd.s32 %v47_v32, %v45_v33 }
  0x19   :  { %v49_v36 = vcvt.s32.f32 %v48_v34 }
  0x1b   :  { %v50_v37 = vmul.f32 %v49_v36, %v19_v35 }
  0x1d   :  { %v51_v38 = vpack.c.bf16 %v50_v37, %v50_v37 }
  0x1f   :  { %97 = vmatmul.msk.bf16.vlgmr.msra.gmra.mxu0 %vm62_vm0, %v51_v38 }
  0x9c   :  { %v75_v40 = vpop.f32.mrf.mxu0 }
  0x9d   :  { %v76_v41 = vadd.f32 %v99_v39, %v75_v40 }
  0x9f   :  { %80 = vst.msk [vmem:[#allocation2] sm:$0xff] %vm79_vm1, %v76_v41 }
  0xa0   :  { %91 = dma.vmem_to_hbm [thread:$0]  %s87_s28, 128, %s89_s5, [#allocation3]  }
  0xa4   :  { %v77_v42 = vpop.f32.mrf.mxu0 }
  0xa5   :  { %124 = dma.done.wait [#allocation3], 128  }
  0xa6   :  { %125 = vsyncadd [#allocation3], 4294967168 }
  0xa7   :  { %96 = vsyncpa [#allocation3], 1 }

</bundles_post_ra>
